<compile_context>
chip_gen: v6e
topology: v6e:2x2x1
jax: 0.10.0
libtpu: 0.0.40
codegen_flags: <defaults>
</compile_context>

<pallas_src>
import functools

import jax
import jax.numpy as jnp
from jax.experimental import pallas as pl
from jax.experimental.pallas import tpu as pltpu


def round_up(x, m):
    return ((x + m - 1) // m) * m


# --------------------------------------------------------------------------
# Pallas kernels
# --------------------------------------------------------------------------

def _mm_kernel(a_ref, b_ref, bias_ref, o_ref, *, act):
    """(tm,K)@(K,tn) bf16 -> f32 acc, fused bias + optional ReLU."""
    y = jnp.dot(a_ref[...], b_ref[...], preferred_element_type=jnp.float32)
    y = y + bias_ref[...]
    if act == "relu":
        y = jnp.maximum(y, 0.0)
    o_ref[...] = y.astype(o_ref.dtype)


def _mm_res_kernel(a_ref, b_ref, bias_ref, r_ref, o_ref, *, act):
    """Same as _mm_kernel with a fused residual add (bottleneck conv3)."""
    y = jnp.dot(a_ref[...], b_ref[...], preferred_element_type=jnp.float32)
    y = y + bias_ref[...] + r_ref[...].astype(jnp.float32)
    if act == "relu":
        y = jnp.maximum(y, 0.0)
    o_ref[...] = y.astype(o_ref.dtype)


@functools.partial(jax.jit, static_argnames=("act", "out_dtype"))
def matmul_bias_act(a, b, bias, residual=None, act="none", out_dtype=jnp.bfloat16):
    """a:(M,K)@b:(K,N) + bias (+residual) (+ReLU).  bf16 operands, f32 accumulate."""
    M, K = a.shape
    N = b.shape[1]
    a = a.astype(jnp.bfloat16)
    b = b.astype(jnp.bfloat16)
    bias = bias.astype(jnp.float32).reshape(1, N)

    # Pad K only when it is large and not lane aligned (stem: 147 -> 256).
    if K > 128 and K % 128 != 0:
        Kp = round_up(K, 128)
        a = jnp.pad(a, ((0, 0), (0, Kp - K)))
        b = jnp.pad(b, ((0, Kp - K), (0, 0)))
        K = Kp

    Mp = round_up(M, 8)
    tm = min(512, Mp)
    Mp = round_up(Mp, tm)
    if N <= 256:
        tn = N
    elif N % 512 == 0:
        tn = 512
    elif N % 256 == 0:
        tn = 256
    elif N % 128 == 0:
        tn = 128
    else:
        tn = N

    if Mp != M:
        a = jnp.pad(a, ((0, Mp - M), (0, 0)))
        if residual is not None:
            residual = jnp.pad(residual, ((0, Mp - M), (0, 0)))

    in_specs = [pl.BlockSpec((tm, K), lambda i, j: (i, 0)),
                pl.BlockSpec((K, tn), lambda i, j: (0, j)),
                pl.BlockSpec((1, tn), lambda i, j: (0, j))]
    if residual is None:
        kernel = functools.partial(_mm_kernel, act=act)
        args = (a, b, bias)
    else:
        kernel = functools.partial(_mm_res_kernel, act=act)
        in_specs.append(pl.BlockSpec((tm, tn), lambda i, j: (i, j)))
        args = (a, b, bias, residual.astype(jnp.bfloat16))

    out = pl.pallas_call(
        kernel,
        out_shape=jax.ShapeDtypeStruct((Mp, N), out_dtype),
        grid=(Mp // tm, N // tn),
        in_specs=in_specs,
        out_specs=pl.BlockSpec((tm, tn), lambda i, j: (i, j)),
        compiler_params=pltpu.CompilerParams(
            dimension_semantics=("parallel", "parallel")),
    )(*args)
    return out[:M] if Mp != M else out


def _grouped_kernel(a_ref, w_ref, bias_ref, o_ref):
    """One 128-lane group bundle, one M-tile: 9 accumulated tap matmuls + bias + ReLU."""
    acc = jnp.dot(a_ref[0], w_ref[0, 0], preferred_element_type=jnp.float32)
    for t in range(1, a_ref.shape[0]):
        acc = acc + jnp.dot(a_ref[t], w_ref[0, t],
                            preferred_element_type=jnp.float32)
    o_ref[...] = jnp.maximum(acc + bias_ref[0], 0.0).astype(o_ref.dtype)


@jax.jit
def grouped_bundle_matmul(a, w, bias):
    """a:(9,M,C) tap-major im2col, w:(NB,9,128,128) block-diag group bundles,
    bias:(NB,1,128).  Output (M, NB*128) bf16, fused BN-bias + ReLU."""
    T9, M, C = a.shape
    NB, _, bk, bn = w.shape
    a = a.astype(jnp.bfloat16)
    Mp = round_up(M, 8)
    tm = min(256, Mp)
    Mp = round_up(Mp, tm)
    if Mp != M:
        a = jnp.pad(a, ((0, 0), (0, Mp - M), (0, 0)))
    out = pl.pallas_call(
        _grouped_kernel,
        out_shape=jax.ShapeDtypeStruct((Mp, NB * bn), jnp.bfloat16),
        grid=(Mp // tm, NB),
        in_specs=[pl.BlockSpec((T9, tm, bk), lambda i, b: (0, i, b)),
                  pl.BlockSpec((1, T9, bk, bn), lambda i, b: (b, 0, 0, 0)),
                  pl.BlockSpec((1, 1, bn), lambda i, b: (b, 0, 0))],
        out_specs=pl.BlockSpec((tm, bn), lambda i, b: (i, b)),
        compiler_params=pltpu.CompilerParams(
            dimension_semantics=("parallel", "parallel")),
    )(a, w, bias)
    return out[:M] if Mp != M else out


def _max_taps_kernel(x_ref, o_ref):
    acc = x_ref[0]
    for t in range(1, x_ref.shape[0]):
        acc = jnp.maximum(acc, x_ref[t])
    o_ref[...] = acc


@jax.jit
def max_over_taps(stacked):
    """Elementwise max over leading tap axis: (T, R, L) -> (R, L)."""
    T, R, L = stacked.shape
    tr = min(512, round_up(R, 8))
    Rp = round_up(R, tr)
    if Rp != R:
        stacked = jnp.pad(stacked, ((0, 0), (0, Rp - R), (0, 0)))
    out = pl.pallas_call(
        _max_taps_kernel,
        out_shape=jax.ShapeDtypeStruct((Rp, L), stacked.dtype),
        grid=(Rp // tr,),
        in_specs=[pl.BlockSpec((T, tr, L), lambda r: (0, r, 0))],
        out_specs=pl.BlockSpec((tr, L), lambda r: (r, 0)),
        compiler_params=pltpu.CompilerParams(
            dimension_semantics=("parallel",)),
    )(stacked)
    return out[:R] if Rp != R else out


def _avgpool_kernel(x_ref, o_ref):
    hw = x_ref.shape[1]
    acc = x_ref[:, 0, :].astype(jnp.float32)
    for i in range(1, hw):
        acc = acc + x_ref[:, i, :].astype(jnp.float32)
    o_ref[...] = acc * (1.0 / hw)


@jax.jit
def adaptive_avgpool(x):
    """AdaptiveAvgPool2d(1): (N, H*W, C) bf16 -> (N, C) f32."""
    N, HW, C = x.shape
    return pl.pallas_call(
        _avgpool_kernel,
        out_shape=jax.ShapeDtypeStruct((N, C), jnp.float32),
    )(x)


def _lstm_kernel(gx_ref, whh_hbm, hout_ref, w_scr, gh_scr, h_scr, c_scr, sem):
    """Fused LSTM recurrence. grid=(T,). W_hh is DMA'd once into a single
    resident VMEM scratch; h/c live in VMEM across timesteps."""
    t = pl.program_id(0)

    @pl.when(t == 0)
    def _():
        cp = pltpu.make_async_copy(whh_hbm, w_scr, sem)
        cp.start()
        cp.wait()
        h_scr[...] = jnp.zeros_like(h_scr)
        c_scr[...] = jnp.zeros_like(c_scr)

    ng, _, gn = w_scr.shape
    h16 = h_scr[...].astype(jnp.bfloat16)
    for g in range(ng):                     # chunked gh = h @ W_hh (bf16 MXU, f32 acc)
        gh_scr[:, g * gn:(g + 1) * gn] = jnp.dot(
            h16, w_scr[g], preferred_element_type=jnp.float32)

    gates = gx_ref[0] + gh_scr[...]
    hid = h_scr.shape[1]

    def sigmoid(v):
        return 1.0 / (1.0 + jnp.exp(-v))

    i_g = sigmoid(gates[:, 0 * hid:1 * hid])
    f_g = sigmoid(gates[:, 1 * hid:2 * hid])
    g_g = jnp.tanh(gates[:, 2 * hid:3 * hid])
    o_g = sigmoid(gates[:, 3 * hid:4 * hid])
    c_new = f_g * c_scr[...] + i_g * g_g
    c_scr[...] = c_new
    h_new = o_g * jnp.tanh(c_new)
    h_scr[...] = h_new
    hout_ref[0] = h_new


@jax.jit
def lstm_recurrent(gx, w_hh_chunks):
    """gx: (T, Bl, 4H) f32 precomputed input gates; w_hh_chunks: (NG, H, GN) bf16."""
    T, Bl, H4 = gx.shape
    NG, H, GN = w_hh_chunks.shape
    return pl.pallas_call(
        _lstm_kernel,
        out_shape=jax.ShapeDtypeStruct((T, Bl, H), jnp.float32),
        grid=(T,),
        in_specs=[pl.BlockSpec((1, Bl, H4), lambda t: (t, 0, 0)),
                  pl.BlockSpec(memory_space=pl.ANY)],      # W_hh stays in HBM, manual DMA
        out_specs=pl.BlockSpec((1, Bl, H), lambda t: (t, 0, 0)),
        scratch_shapes=[pltpu.VMEM((NG, H, GN), jnp.bfloat16),  # resident W_hh (32 MiB)
                        pltpu.VMEM((Bl, H4), jnp.float32),      # gh
                        pltpu.VMEM((Bl, H), jnp.float32),       # h
                        pltpu.VMEM((Bl, H), jnp.float32),       # c
                        pltpu.SemaphoreType.DMA(())],
        compiler_params=pltpu.CompilerParams(
            dimension_semantics=("arbitrary",),
            vmem_limit_bytes=48 * 1024 * 1024),            # fits v7x's 64 MiB physical VMEM
    )(gx, w_hh_chunks)


# --------------------------------------------------------------------------
# Glue: im2col, conv wrappers, ResNeXt50_32x4d assembly
# --------------------------------------------------------------------------

GROUPS = 32
EXPANSION = 4
LAYER_CFG = [(64, 3, 1), (128, 4, 2), (256, 6, 2), (512, 3, 2)]  # (planes, blocks, stride)


def im2col(x, kh, kw, stride, pad):
    """x: (N,H,W,C) NHWC -> ((N*Ho*Wo, kh*kw*C), (N,Ho,Wo))."""
    N, H, W, C = x.shape
    Ho = (H + 2 * pad - kh) // stride + 1
    Wo = (W + 2 * pad - kw) // stride + 1
    if pad:
        x = jnp.pad(x, ((0, 0), (pad, pad), (pad, pad), (0, 0)))
    if kh == 1 and kw == 1:
        x = x[:, :stride * (Ho - 1) + 1:stride, :stride * (Wo - 1) + 1:stride, :]
        return x.reshape(N * Ho * Wo, C), (N, Ho, Wo)
    taps = []
    for i in range(kh):
        for j in range(kw):
            taps.append(x[:, i:i + stride * (Ho - 1) + 1:stride,
                          j:j + stride * (Wo - 1) + 1:stride, :])
    patches = jnp.stack(taps, axis=3)                 # (N, Ho, Wo, kh*kw, C)
    return patches.reshape(N * Ho * Wo, kh * kw * C), (N, Ho, Wo)


def conv_bn(x, w, bias, kh, kw, stride, pad, act, residual=None):
    """Conv2d (+ folded eval BN) (+ residual) (+ ReLU) via im2col + Pallas matmul."""
    cols, (N, Ho, Wo) = im2col(x, kh, kw, stride, pad)
    y = matmul_bias_act(cols, w, bias, residual=residual, act=act,
                        out_dtype=jnp.bfloat16)
    return y.reshape(N, Ho, Wo, w.shape[1])


def grouped_conv_bn_relu(x, w_bundled, bias_bundled, stride):
    """Grouped 3x3 conv (+BN +ReLU).  Tap-major im2col, block-diag group bundles."""
    N, H, W, C = x.shape
    Ho = (H + 2 - 3) // stride + 1
    Wo = (W + 2 - 3) // stride + 1
    xp = jnp.pad(x, ((0, 0), (1, 1), (1, 1), (0, 0)))
    taps = [xp[:, i:i + stride * (Ho - 1) + 1:stride,
               j:j + stride * (Wo - 1) + 1:stride, :]
            for i in range(3) for j in range(3)]
    a = jnp.stack(taps, axis=0).reshape(9, N * Ho * Wo, C)     # (9, M, C)
    out = grouped_bundle_matmul(a, w_bundled, bias_bundled)    # (M, C_out)
    return out.reshape(N, Ho, Wo, -1)


def maxpool_3x3_s2_p1(x):
    """MaxPool2d(kernel=3, stride=2, padding=1), lane-dense Pallas reduction."""
    N, H, W, C = x.shape
    Ho = (H + 2 - 3) // 2 + 1
    Wo = (W + 2 - 3) // 2 + 1
    xp = jnp.pad(x, ((0, 0), (1, 1), (1, 1), (0, 0)),
                 constant_values=-jnp.inf)
    taps = [xp[:, i:i + 2 * (Ho - 1) + 1:2, j:j + 2 * (Wo - 1) + 1:2, :]
            for i in range(3) for j in range(3)]
    stacked = jnp.stack(taps, axis=0).reshape(9, N * Ho * Wo, C)
    M = N * Ho * Wo
    if (M * C) % 128 == 0:        # elementwise reduction -> fold C into a 128-lane axis
        out = max_over_taps(stacked.reshape(9, (M * C) // 128, 128)).reshape(M, C)
    else:
        out = max_over_taps(stacked)
    return out.reshape(N, Ho, Wo, C)


# ------------------------- deterministic parameter init -------------------------

def make_conv_params(key, kh, kw, cin, cout):
    """Conv weight in (kh*kw*cin, cout) bf16 matmul layout, eval-BN folded in."""
    k_w, k_g, k_b = jax.random.split(key, 3)
    fan_in = kh * kw * cin
    w = jax.random.normal(k_w, (kh, kw, cin, cout), jnp.float32) * (2.0 / fan_in) ** 0.5
    gamma = 1.0 + 0.1 * jax.random.normal(k_g, (cout,), jnp.float32)
    beta = 0.05 * jax.random.normal(k_b, (cout,), jnp.float32)
    scale = gamma / jnp.sqrt(1.0 + 1e-5)   # BN(running_mean=0, running_var=1, eps=1e-5)
    w = (w * scale).reshape(kh * kw * cin, cout)
    return w.astype(jnp.bfloat16), beta    # bias stays f32 for the epilogue


def make_grouped_conv_params(key, cin, cout, groups):
    """Grouped 3x3 weights packed into 128-lane bundles: (NB, 9, 128, 128) bf16."""
    k_w, k_g, k_b = jax.random.split(key, 3)
    cig, cog = cin // groups, cout // groups
    fan_in = 9 * cig
    w = jax.random.normal(k_w, (groups, 3, 3, cig, cog), jnp.float32) * (2.0 / fan_in) ** 0.5
    gamma = 1.0 + 0.1 * jax.random.normal(k_g, (cout,), jnp.float32)
    beta = 0.05 * jax.random.normal(k_b, (cout,), jnp.float32)
    scale = (gamma / jnp.sqrt(1.0 + 1e-5)).reshape(groups, cog)
    w = w * scale.reshape(groups, 1, 1, 1, cog)
    assert cig == cog and 128 % cog == 0 and groups % (128 // cog) == 0
    bg = 128 // cog                               # groups per bundle (32/16/8/4)
    nb = groups // bg                             # bundles per layer
    w = w.reshape(nb, bg, 9, cig, cog)
    eye = jnp.eye(bg, dtype=w.dtype)
    wb = jnp.einsum("nbkic,bB->nkbiBc", w, eye)   # block-diagonal within each bundle
    wb = wb.reshape(nb, 9, bg * cig, bg * cog)    # (nb, 9, 128, 128)
    bias = beta.reshape(nb, 1, bg * cog)
    return wb.astype(jnp.bfloat16), bias


def init_params(key, num_classes=2, latent_dim=2048, hidden_dim=2048):
    params = {}
    key, k = jax.random.split(key)
    params["stem"] = make_conv_params(k, 7, 7, 3, 64)

    inplanes = 64
    layers = []
    for planes, nblocks, _ in LAYER_CFG:
        width = planes * 2              # resnext50_32x4d: int(planes * 4/64) * 32
        outp = planes * EXPANSION
        blocks = []
        for b in range(nblocks):
            key, k1, k2, k3, kd = jax.random.split(key, 5)
            bp = {
                "conv1": make_conv_params(k1, 1, 1, inplanes, width),
                "conv2": make_grouped_conv_params(k2, width, width, GROUPS),
                "conv3": make_conv_params(k3, 1, 1, width, outp),
            }
            if b == 0:  # downsample (stride != 1 or inplanes != planes*expansion)
                bp["downsample"] = make_conv_params(kd, 1, 1, inplanes, outp)
            blocks.append(bp)
            inplanes = outp
        layers.append(blocks)
    params["layers"] = layers

    # LSTM(latent_dim=2048, hidden_dim=2048, 1 layer, unidirectional)
    key, ki, kh, kb1, kb2 = jax.random.split(key, 5)
    bound = hidden_dim ** -0.5
    w_ih_t = jax.random.uniform(ki, (latent_dim, 4 * hidden_dim), jnp.float32,
                                -bound, bound)
    w_hh_t = jax.random.uniform(kh, (hidden_dim, 4 * hidden_dim), jnp.float32,
                                -bound, bound)
    ng = 8 if (4 * hidden_dim) % 8 == 0 else 1
    gn = (4 * hidden_dim) // ng
    params["lstm"] = {
        "w_ih_t": w_ih_t.astype(jnp.bfloat16),
        "w_hh_chunks": w_hh_t.reshape(hidden_dim, ng, gn)
                             .transpose(1, 0, 2).astype(jnp.bfloat16),
        "b": (jax.random.uniform(kb1, (4 * hidden_dim,), jnp.float32, -bound, bound)
              + jax.random.uniform(kb2, (4 * hidden_dim,), jnp.float32, -bound, bound)),
    }
    key, kw_, kb_ = jax.random.split(key, 3)
    params["linear1"] = {
        "w_t": jax.random.uniform(kw_, (hidden_dim, num_classes), jnp.float32,
                                  -bound, bound).astype(jnp.bfloat16),
        "b": jax.random.uniform(kb_, (num_classes,), jnp.float32, -bound, bound),
    }
    return params


# ------------------------------- forward pass -------------------------------

def bottleneck(x, bp, stride):
    out = conv_bn(x, *bp["conv1"], 1, 1, 1, 0, "relu")
    out = grouped_conv_bn_relu(out, *bp["conv2"], stride)
    if "downsample" in bp:
        identity = conv_bn(x, *bp["downsample"], 1, 1, stride, 0, "none")
    else:
        identity = x
    cout = bp["conv3"][0].shape[1]
    res = identity.reshape(-1, cout)
    # conv3 + BN + residual add + ReLU fused into one matmul epilogue
    return conv_bn(out, *bp["conv3"], 1, 1, 1, 0, "relu", residual=res)


def backbone(x, params):
    """ResNeXt50_32x4d children()[:-2].  x: NHWC bf16 -> (N, H/32, W/32, 2048) bf16."""
    x = conv_bn(x, *params["stem"], 7, 7, 2, 3, "relu")
    x = maxpool_3x3_s2_p1(x)
    for blocks, (_, _, stride) in zip(params["layers"], LAYER_CFG):
        for b, bp in enumerate(blocks):
            x = bottleneck(x, bp, stride if b == 0 else 1)
    return x


def lstm_forward(x_seq, lstm_params):
    # nn.LSTM default batch_first=False: dim0 = time, dim1 = batch (as in the
    # original module, which feeds (batch, seq, feat) and thus swaps the roles).
    T, Bl, D = x_seq.shape
    H4 = lstm_params["w_ih_t"].shape[1]
    gx = matmul_bias_act(x_seq.reshape(T * Bl, D), lstm_params["w_ih_t"],
                         lstm_params["b"], act="none", out_dtype=jnp.float32)
    gx = gx.reshape(T, Bl, H4)
    return lstm_recurrent(gx, lstm_params["w_hh_chunks"])     # (T, Bl, hidden)


def deepfake_detector_forward(x, params):
    """x: (batch, seq, C, H, W) float32 (PyTorch NCHW frames).  Returns (fmap, out)."""
    B, S, C, H, W = x.shape
    frames = x.reshape(B * S, C, H, W).transpose(0, 2, 3, 1)      # NCHW -> NHWC
    frames = frames.astype(jnp.bfloat16)
    fmap_nhwc = backbone(frames, params)                          # (B*S, h', w', 2048) bf16
    fmap = fmap_nhwc.transpose(0, 3, 1, 2).astype(jnp.float32)    # back to NCHW f32
    n, hp, wp, cc = fmap_nhwc.shape
    pooled = adaptive_avgpool(fmap_nhwc.reshape(n, hp * wp, cc))  # (B*S, 2048) f32
    x_seq = pooled.reshape(B, S, cc)
    x_lstm = lstm_forward(x_seq, params["lstm"])                  # (B, S, hidden)
    last = x_lstm[:, -1, :]                                       # mirrors x_lstm[:, -1, :]
    logits = matmul_bias_act(last, params["linear1"]["w_t"],
                             params["linear1"]["b"], act="none",
                             out_dtype=jnp.float32)
    # nn.Dropout(0.4) is identity at inference; self.relu (LeakyReLU) unused in forward.
    # TODO(synk): training-mode dropout (random Bernoulli mask) not implemented.
    return fmap, logits


# --------------------------------------------------------------------------

if __name__ == "__main__":
    batch_size, seq_length, C, H, W = 2, 4, 3, 64, 64
    x = jax.random.normal(jax.random.PRNGKey(0),
                          (batch_size, seq_length, C, H, W), jnp.float32)
    params = init_params(jax.random.PRNGKey(42))

    fmap, out = deepfake_detector_forward(x, params)
    jax.block_until_ready((fmap, out))

    assert fmap.shape == (batch_size * seq_length, 2048, H // 32, W // 32), fmap.shape
    assert out.shape == (batch_size, 2), out.shape
    assert fmap.dtype == jnp.float32 and out.dtype == jnp.float32

    print("KERNEL_OK")
</pallas_src>

<mosaic_0001>
module attributes {stable_mosaic.version = 11 : i64} {
  func.func @_mm_kernel(%arg0: i32, %arg1: i32, %arg2: memref<512x256xbf16, #tpu.memory_space<vmem>>, %arg3: memref<256x64xbf16, #tpu.memory_space<vmem>>, %arg4: memref<1x64xf32, #tpu.memory_space<vmem>>, %arg5: memref<512x64xbf16, #tpu.memory_space<vmem>>) attributes {dimension_semantics = [#tpu.dimension_semantics<parallel>, #tpu.dimension_semantics<parallel>], iteration_bounds = array<i64: 16, 1>, scalar_prefetch = 0 : i64, scratch_operands = 0 : i64, tpu.core_type = #tpu.core_type<tc>, window_params = [{transform_indices = @transform_0, window_bounds = array<i64: 512, 256>}, {transform_indices = @transform_1, window_bounds = array<i64: 256, 64>}, {transform_indices = @transform_2, window_bounds = array<i64: 1, 64>}, {transform_indices = @transform_3, window_bounds = array<i64: 512, 64>}]} {
    %c0 = arith.constant 0 : index
    %c0_0 = arith.constant 0 : index
    %0 = vector.load %arg2[%c0, %c0_0] : memref<512x256xbf16, #tpu.memory_space<vmem>>, vector<512x256xbf16>
    %c0_1 = arith.constant 0 : index
    %c0_2 = arith.constant 0 : index
    %1 = vector.load %arg3[%c0_1, %c0_2] : memref<256x64xbf16, #tpu.memory_space<vmem>>, vector<256x64xbf16>
    %cst = arith.constant dense<0.000000e+00> : vector<512x64xf32>
    %2 = tpu.matmul %0, %1, %cst {dimension_numbers = #tpu.dot_dimension_numbers<[1], [0], [0], [1], [0, 0, 1, 1], [], []>} : vector<512x256xbf16>, vector<256x64xbf16>, vector<512x64xf32> -> vector<512x64xf32>
    %c0_3 = arith.constant 0 : index
    %c0_4 = arith.constant 0 : index
    %3 = vector.load %arg4[%c0_3, %c0_4] : memref<1x64xf32, #tpu.memory_space<vmem>>, vector<1x64xf32>
    %4 = vector.broadcast %3 : vector<1x64xf32> to vector<512x64xf32>
    %5 = arith.addf %2, %4 : vector<512x64xf32>
    %cst_5 = arith.constant 0.000000e+00 : f32
    %6 = vector.broadcast %cst_5 : f32 to vector<512x64xf32>
    %7 = arith.maximumf %5, %6 : vector<512x64xf32>
    %8 = arith.truncf %7 : vector<512x64xf32> to vector<512x64xbf16>
    %c0_6 = arith.constant 0 : index
    %c0_7 = arith.constant 0 : index
    %9 = vector.load %arg5[%c0_6, %c0_7] : memref<512x64xbf16, #tpu.memory_space<vmem>>, vector<512x64xbf16>
    tpu.vector_store %arg5[%c0_6, %c0_7], %8 {strides = array<i32>} : memref<512x64xbf16, #tpu.memory_space<vmem>>, vector<512x64xbf16>,
    return
  }
  func.func @transform_0(%arg0: i32, %arg1: i32) -> (i32, i32) {
    %c0_i32 = arith.constant 0 : i32
    %c0_i32_0 = arith.constant 0 : i32
    return %arg0, %c0_i32 : i32, i32
  }
  func.func @transform_1(%arg0: i32, %arg1: i32) -> (i32, i32) {
    %c0_i32 = arith.constant 0 : i32
    %c0_i32_0 = arith.constant 0 : i32
    return %c0_i32, %arg1 : i32, i32
  }
  func.func @transform_2(%arg0: i32, %arg1: i32) -> (i32, i32) {
    %c0_i32 = arith.constant 0 : i32
    %c0_i32_0 = arith.constant 0 : i32
    return %c0_i32, %arg1 : i32, i32
  }
  func.func @transform_3(%arg0: i32, %arg1: i32) -> (i32, i32) {
    %c0_i32 = arith.constant 0 : i32
    return %arg0, %arg1 : i32, i32
  }
}

</mosaic_0001>

<bundles_post_ra>
// kernel: matmul_bias_act.1
= control target key start
LH: loop header
LB: loop body
LE: loop exit
PB: predicated region body
PF: predicated region fallthrough
CT: control target
= control target key end

     0   :  { %s1962_s12 = smov 0   ;;  %s1964_s13 = smov 0   ;;  %s2344_s0 = inlined_call_operand.vmem [shape: bf16[8192,256], index: 0, kind: input, shape index: {}]   ;;  %s2345_s1 = inlined_call_operand.vmem [shape: bf16[256,64], index: 1, kind: input, shape index: {}]   ;;  %s2346_s2 = inlined_call_operand.vmem [shape: f32[1,64], index: 2, kind: input, shape index: {}]   ;;  %s2347_s3 = inlined_call_operand.vmem [shape: bf16[8192,64], index: 3, kind: output, shape index: {}]  }
   0x1   :  { %s1966_s14 = smov 0  }
   0x2 LB: > { %s25_s15 = sadd.s32 1, %s1935_s13  ;;  %p1530_p0 = scmp.ge.s32.totalorder %s1939_s14, 1  ;;  %s1939_s14 = sphi %s1966_s14, %s13_s14   ;;  %s1935_s13 = sphi %s1964_s13, %s2349_s13   ;;  %s1931_s12 = sphi %s1962_s12, %s2348_s12  }
   0x3   : > { %p27_p1 = scmp.ge.s32.totalorder %s25_s15, 16  ;;  %p170_p2 = scmp.lt.s32.totalorder %s1939_s14, 17 }
   0x5   : > { %s2351_s15 = smov (%p27_p1, %s25_s15), 0  ;;  %p171_p3 = pnand %p1530_p0, %p170_p2 }
   0x6   : > { %s1531_s18 = sshll.u32 (!%p171_p3), %s1931_s12, 6 }
   0x7   : > { %174 = sbr.rel (%p171_p3) target bundleno = 401 (0x191), region = 32  ;;  %p206_p4 = scmp.lt.s32.totalorder (!%p171_p3), %s1531_s18, 1023 }
   0xc   : > { %v1805_v0 = vld [vmem:[%s2345_s1 + $0x38] sm:$0xff]   ;;  %v1941_v1 = vmov 0   ;;  %v1806_v2 = vld [vmem:[%s2345_s1 + $0x30] sm:$0xff]   ;;  %v1807_v3 = vld [vmem:[%s2345_s1 + $0x28] sm:$0xff]   ;;  %s2353_s18 = smov (!%p206_p4, %s1531_s18), 1023  ;;  %vm1357_vm0 = vcmask 519168  }
   0xd   : > { %748 = vmatprep.subr.bf16.mxu0 %v1941_v1  ;;  %1748 = vmatprep.subr.bf16.mxu1 %v1941_v1  ;;  %v1808_v4 = vld [vmem:[%s2345_s1 + $0x20] sm:$0xff]   ;;  %s1683_s25 = sshll.u32 %s2353_s18, 3  ;;  %v1809_v5 = vld [vmem:[%s2345_s1 + $0x18] sm:$0xff]   ;;  %v1810_v7 = vld [vmem:[%s2345_s1 + $0x10] sm:$0xff]   ;;  %s1535_s6 = sshll.u32 %s2353_s18, 2 }
   0xe   : > { %749 = vmatpush1.bf16.msra.mxu0 %v1805_v0  ;;  %1764 = vmatpush1.bf16.msra.mxu1 %v1805_v0  ;;  %s2009_s30 = scalar_lea.vmem %s2344_s0, %s1683_s25  ;;  %v1811_v9 = vld [vmem:[%s2345_s1 + $0x8] sm:$0xff]   ;;  %v1812_v10 = vld [vmem:[%s2345_s1] sm:$0xff]   ;;  %v1813_v11 = vld [vmem:[%s2345_s1 + $0x78] sm:$0xff]   ;;  %s2143_s8 = scalar_lea.vmem %s2347_s3, %s1535_s6 }
   0xf   : > { %750 = vmatprep.subr.bf16.mxu0 %v1941_v1  ;;  %1749 = vmatprep.subr.bf16.mxu1 %v1941_v1  ;;  %v1823_v6 = vld [vmem:[%s2009_s30 + $0x4] ss:$8 sps:$4 sm:$0xff]   ;;  %v1814_v12 = vld [vmem:[%s2345_s1 + $0x70] sm:$0xff]   ;;  %v1817_v15 = vld [vmem:[%s2345_s1 + $0x58] sm:$0xff]  }
  0x10   : > { %v1826_v8 = vld [vmem:[%s2009_s30 + $0x104] ss:$8 sps:$4 sm:$0xff]   ;;  %780 = vmatprep.mubr.bf16.mxu0 %v1823_v6  ;;  %v1818_v16 = vld [vmem:[%s2345_s1 + $0x50] sm:$0xff]   ;;  %v1821_v19 = vld [vmem:[%s2009_s30] ss:$8 sps:$4 sm:$0xff]  }
  0x11   : > { %908 = vmatprep.mubr.bf16.mxu1 %v1826_v8  ;;  %v1815_v13 = vld [vmem:[%s2345_s1 + $0x68] sm:$0xff]   ;;  %v1816_v14 = vld [vmem:[%s2345_s1 + $0x60] sm:$0xff]   ;;  %v1827_v21 = vld [vmem:[%s2009_s30 + $0x14] ss:$8 sps:$4 sm:$0xff]  }
  0x12   : > { %751 = vmatpush1.bf16.msra.mxu0 %v1806_v2  ;;  %1765 = vmatpush1.bf16.msra.mxu1 %v1806_v2  ;;  %v1819_v17 = vld [vmem:[%s2345_s1 + $0x48] sm:$0xff]   ;;  %v1820_v18 = vld [vmem:[%s2345_s1 + $0x40] sm:$0xff]   ;;  %v1829_v22 = vld [vmem:[%s2009_s30 + $0x114] ss:$8 sps:$4 sm:$0xff]  }
  0x13   : > { %752 = vmatprep.subr.bf16.mxu0 %v1941_v1  ;;  %1750 = vmatprep.subr.bf16.mxu1 %v1941_v1  ;;  %v1824_v20 = vld [vmem:[%s2009_s30 + $0x100] ss:$8 sps:$4 sm:$0xff]   ;;  %v1831_v23 = vld [vmem:[%s2009_s30 + $0x10] ss:$8 sps:$4 sm:$0xff]   ;;  %v1833_v25 = vld [vmem:[%s2009_s30 + $0x24] ss:$8 sps:$4 sm:$0xff]  }
  0x14   : > { %v1832_v24 = vld [vmem:[%s2009_s30 + $0x110] ss:$8 sps:$4 sm:$0xff]   ;;  %v1835_v26 = vld [vmem:[%s2009_s30 + $0x124] ss:$8 sps:$4 sm:$0xff]   ;;  %v1837_v27 = vld [vmem:[%s2009_s30 + $0x20] ss:$8 sps:$4 sm:$0xff]  }
  0x15   : > { %v1838_v28 = vld [vmem:[%s2009_s30 + $0x120] ss:$8 sps:$4 sm:$0xff]   ;;  %v1839_v29 = vld [vmem:[%s2009_s30 + $0x34] ss:$8 sps:$4 sm:$0xff]   ;;  %v1843_v31 = vld [vmem:[%s2009_s30 + $0x30] ss:$8 sps:$4 sm:$0xff]  }
  0x16   : > { %753 = vmatpush1.bf16.msra.mxu0 %v1807_v3  ;;  %1766 = vmatpush1.bf16.msra.mxu1 %v1807_v3  ;;  %v1841_v30 = vld [vmem:[%s2009_s30 + $0x134] ss:$8 sps:$4 sm:$0xff]   ;;  %v1844_v32 = vld [vmem:[%s2009_s30 + $0x130] ss:$8 sps:$4 sm:$0xff]   ;;  %v1845_v33 = vld [vmem:[%s2009_s30 + $0x44] ss:$8 sps:$4 sm:$0xff]  }
  0x17   : > { %754 = vmatprep.subr.bf16.mxu0 %v1941_v1  ;;  %1751 = vmatprep.subr.bf16.mxu1 %v1941_v1  ;;  %v1847_v34 = vld [vmem:[%s2009_s30 + $0x144] ss:$8 sps:$4 sm:$0xff]   ;;  %v1849_v35 = vld [vmem:[%s2009_s30 + $0x40] ss:$8 sps:$4 sm:$0xff]   ;;  %v1851_v37 = vld [vmem:[%s2009_s30 + $0x54] ss:$8 sps:$4 sm:$0xff]  }
  0x18   : > { %v1850_v36 = vld [vmem:[%s2009_s30 + $0x140] ss:$8 sps:$4 sm:$0xff]   ;;  %v1853_v38 = vld [vmem:[%s2009_s30 + $0x154] ss:$8 sps:$4 sm:$0xff]   ;;  %v1855_v39 = vld [vmem:[%s2009_s30 + $0x50] ss:$8 sps:$4 sm:$0xff]  }
  0x19   : > { %v1856_v40 = vld [vmem:[%s2009_s30 + $0x150] ss:$8 sps:$4 sm:$0xff]   ;;  %v1857_v41 = vld [vmem:[%s2009_s30 + $0x64] ss:$8 sps:$4 sm:$0xff]   ;;  %v1861_v43 = vld [vmem:[%s2009_s30 + $0x60] ss:$8 sps:$4 sm:$0xff]  }
  0x1a   : > { %755 = vmatpush1.bf16.msra.mxu0 %v1808_v4  ;;  %1767 = vmatpush1.bf16.msra.mxu1 %v1808_v4  ;;  %v1859_v42 = vld [vmem:[%s2009_s30 + $0x164] ss:$8 sps:$4 sm:$0xff]   ;;  %v1862_v44 = vld [vmem:[%s2009_s30 + $0x160] ss:$8 sps:$4 sm:$0xff]   ;;  %v1863_v45 = vld [vmem:[%s2009_s30 + $0x74] ss:$8 sps:$4 sm:$0xff]  }
  0x1b   : > { %756 = vmatprep.subr.bf16.mxu0 %v1941_v1  ;;  %1752 = vmatprep.subr.bf16.mxu1 %v1941_v1  ;;  %v1865_v46 = vld [vmem:[%s2009_s30 + $0x174] ss:$8 sps:$4 sm:$0xff]   ;;  %v1867_v47 = vld [vmem:[%s2009_s30 + $0x70] ss:$8 sps:$4 sm:$0xff]   ;;  %v1869_v49 = vld [vmem:[%s2009_s30 + $0x84] ss:$8 sps:$4 sm:$0xff]  }
  0x1c   : > { %v1868_v48 = vld [vmem:[%s2009_s30 + $0x170] ss:$8 sps:$4 sm:$0xff]   ;;  %v1871_v50 = vld [vmem:[%s2009_s30 + $0x184] ss:$8 sps:$4 sm:$0xff]   ;;  %v1873_v51 = vld [vmem:[%s2009_s30 + $0x80] ss:$8 sps:$4 sm:$0xff]  }
  0x1d   : > { %v1874_v52 = vld [vmem:[%s2009_s30 + $0x180] ss:$8 sps:$4 sm:$0xff]   ;;  %v1875_v53 = vld [vmem:[%s2009_s30 + $0x94] ss:$8 sps:$4 sm:$0xff]   ;;  %v1879_v55 = vld [vmem:[%s2009_s30 + $0x90] ss:$8 sps:$4 sm:$0xff]  }
  0x1e   : > { %757 = vmatpush1.bf16.msra.mxu0 %v1809_v5  ;;  %1768 = vmatpush1.bf16.msra.mxu1 %v1809_v5  ;;  %v1877_v54 = vld [vmem:[%s2009_s30 + $0x194] ss:$8 sps:$4 sm:$0xff]   ;;  %v1880_v56 = vld [vmem:[%s2009_s30 + $0x190] ss:$8 sps:$4 sm:$0xff]   ;;  %v1881_v57 = vld [vmem:[%s2009_s30 + $0xa4] ss:$8 sps:$4 sm:$0xff]  }
  0x1f   : > { %758 = vmatprep.subr.bf16.mxu0 %v1941_v1  ;;  %1753 = vmatprep.subr.bf16.mxu1 %v1941_v1  ;;  %v1883_v58 = vld [vmem:[%s2009_s30 + $0x1a4] ss:$8 sps:$4 sm:$0xff]   ;;  %v1885_v59 = vld [vmem:[%s2009_s30 + $0xa0] ss:$8 sps:$4 sm:$0xff]   ;;  %v1887_v61 = vld [vmem:[%s2009_s30 + $0xb4] ss:$8 sps:$4 sm:$0xff]  }
  0x20   : > { %v1886_v60 = vld [vmem:[%s2009_s30 + $0x1a0] ss:$8 sps:$4 sm:$0xff]   ;;  %v1889_v62 = vld [vmem:[%s2009_s30 + $0x1b4] ss:$8 sps:$4 sm:$0xff]   ;;  %v1891_v63 = vld [vmem:[%s2009_s30 + $0xb0] ss:$8 sps:$4 sm:$0xff]  }
  0x21   : > { %v1892_v0 = vld [vmem:[%s2009_s30 + $0x1b0] ss:$8 sps:$4 sm:$0xff]   ;;  %v1895_v2 = vld [vmem:[%s2009_s30 + $0x1c4] ss:$8 sps:$4 sm:$0xff]   ;;  %v1897_v3 = vld [vmem:[%s2009_s30 + $0xc0] ss:$8 sps:$4 sm:$0xff]  }
  0x22   : > { %759 = vmatpush1.bf16.msra.mxu0 %v1810_v7  ;;  %1769 = vmatpush1.bf16.msra.mxu1 %v1810_v7  ;;  %v1898_v4 = vld [vmem:[%s2009_s30 + $0x1c0] ss:$8 sps:$4 sm:$0xff]   ;;  %v1899_v5 = vld [vmem:[%s2009_s30 + $0xd4] ss:$8 sps:$4 sm:$0xff]   ;;  %v1903_v7 = vld [vmem:[%s2009_s30 + $0xd0] ss:$8 sps:$4 sm:$0xff]  }
  0x23   : > { %760 = vmatprep.subr.bf16.mxu0 %v1941_v1  ;;  %1754 = vmatprep.subr.bf16.mxu1 %v1941_v1  ;;  %v1901_v6 = vld [vmem:[%s2009_s30 + $0x1d4] ss:$8 sps:$4 sm:$0xff]   ;;  %v1904_v8 = vld [vmem:[%s2009_s30 + $0x1d0] ss:$8 sps:$4 sm:$0xff]  }
  0x26   : > { %761 = vmatpush1.bf16.msra.mxu0 %v1811_v9  ;;  %1770 = vmatpush1.bf16.msra.mxu1 %v1811_v9  ;;  %v1905_v9 = vld [vmem:[%s2009_s30 + $0xe4] ss:$8 sps:$4 sm:$0xff]  }
  0x27   : > { %762 = vmatprep.subr.bf16.mxu0 %v1941_v1  ;;  %1755 = vmatprep.subr.bf16.mxu1 %v1941_v1 }
  0x2a   : > { %763 = vmatpush1.bf16.msra.mxu0 %v1812_v10  ;;  %1771 = vmatpush1.bf16.msra.mxu1 %v1812_v10  ;;  %v1907_v10 = vld [vmem:[%s2009_s30 + $0x1e4] ss:$8 sps:$4 sm:$0xff]  }
  0x2b   : > { %764 = vmatprep.subr.bf16.mxu0 %v1941_v1  ;;  %1756 = vmatprep.subr.bf16.mxu1 %v1941_v1 }
  0x2e   : > { %765 = vmatpush2.bf16.msra.mxu0 %v1813_v11  ;;  %1772 = vmatpush2.bf16.msra.mxu1 %v1813_v11  ;;  %v1909_v11 = vld [vmem:[%s2009_s30 + $0xe0] ss:$8 sps:$4 sm:$0xff]  }
  0x2f   : > { %766 = vmatprep.subr.bf16.mxu0 %v1941_v1  ;;  %1757 = vmatprep.subr.bf16.mxu1 %v1941_v1 }
  0x32   : > { %767 = vmatpush2.bf16.msra.mxu0 %v1814_v12  ;;  %1773 = vmatpush2.bf16.msra.mxu1 %v1814_v12  ;;  %v1910_v12 = vld [vmem:[%s2009_s30 + $0x1e0] ss:$8 sps:$4 sm:$0xff]  }
  0x33   : > { %768 = vmatprep.subr.bf16.mxu0 %v1941_v1  ;;  %1758 = vmatprep.subr.bf16.mxu1 %v1941_v1 }
  0x36   : > { %769 = vmatpush2.bf16.msra.mxu0 %v1815_v13  ;;  %1774 = vmatpush2.bf16.msra.mxu1 %v1815_v13  ;;  %v1911_v13 = vld [vmem:[%s2009_s30 + $0xf4] ss:$8 sps:$4 sm:$0xff]  }
  0x37   : > { %770 = vmatprep.subr.bf16.mxu0 %v1941_v1  ;;  %1759 = vmatprep.subr.bf16.mxu1 %v1941_v1 }
  0x3a   : > { %771 = vmatpush2.bf16.msra.mxu0 %v1816_v14  ;;  %1775 = vmatpush2.bf16.msra.mxu1 %v1816_v14  ;;  %v1913_v14 = vld [vmem:[%s2009_s30 + $0x1f4] ss:$8 sps:$4 sm:$0xff]  }
  0x3b   : > { %772 = vmatprep.subr.bf16.mxu0 %v1941_v1  ;;  %1760 = vmatprep.subr.bf16.mxu1 %v1941_v1 }
  0x3e   : > { %773 = vmatpush2.bf16.msra.mxu0 %v1817_v15  ;;  %1776 = vmatpush2.bf16.msra.mxu1 %v1817_v15  ;;  %v1915_v15 = vld [vmem:[%s2009_s30 + $0xf0] ss:$8 sps:$4 sm:$0xff]  }
  0x3f   : > { %774 = vmatprep.subr.bf16.mxu0 %v1941_v1  ;;  %1761 = vmatprep.subr.bf16.mxu1 %v1941_v1 }
  0x42   : > { %775 = vmatpush2.bf16.msra.mxu0 %v1818_v16  ;;  %1777 = vmatpush2.bf16.msra.mxu1 %v1818_v16  ;;  %v1916_v16 = vld [vmem:[%s2009_s30 + $0x1f0] ss:$8 sps:$4 sm:$0xff]  }
  0x43   : > { %776 = vmatprep.subr.bf16.mxu0 %v1941_v1  ;;  %1762 = vmatprep.subr.bf16.mxu1 %v1941_v1 }
  0x46   : > { %777 = vmatpush2.bf16.msra.mxu0 %v1819_v17  ;;  %1778 = vmatpush2.bf16.msra.mxu1 %v1819_v17  ;;  %v2135_v17 = vld [vmem:[%s2346_s2] ss:$0 sm:$0xff] }
  0x47   : > { %778 = vmatprep.subr.bf16.mxu0 %v1941_v1  ;;  %1763 = vmatprep.subr.bf16.mxu1 %v1941_v1  ;;  %v1893_v1 = vld [vmem:[%s2009_s30 + $0xc4] ss:$8 sps:$4 sm:$0xff]  }
  0x4a   : > { %779 = vmatpush2.bf16.msra.mxu0 %v1820_v18  ;;  %1779 = vmatpush2.bf16.msra.mxu1 %v1820_v18 }
  0x4d   : > { %781 = vmatmul.mubr.bf16.vlgmr.msra.gmra.mxu0 %v1821_v19  ;;  %909 = vmatmul.mubr.bf16.vlgmr.msra.gmra.mxu1 %v1824_v20 }
  0x4e   : > { %788 = vmatprep.mubr.bf16.mxu0 %v1827_v21  ;;  %916 = vmatprep.mubr.bf16.mxu1 %v1829_v22 }
  0x55   : > { %789 = vmatmul.mubr.bf16.gmra.mxu0 %v1831_v23  ;;  %917 = vmatmul.mubr.bf16.gmra.mxu1 %v1832_v24 }
  0x56   : > { %796 = vmatprep.mubr.bf16.mxu0 %v1833_v25  ;;  %924 = vmatprep.mubr.bf16.mxu1 %v1835_v26 }
  0x5d   : > { %797 = vmatmul.mubr.bf16.gmra.mxu0 %v1837_v27  ;;  %925 = vmatmul.mubr.bf16.gmra.mxu1 %v1838_v28 }
  0x5e   : > { %804 = vmatprep.mubr.bf16.mxu0 %v1839_v29  ;;  %932 = vmatprep.mubr.bf16.mxu1 %v1841_v30 }
  0x65   : > { %805 = vmatmul.mubr.bf16.gmra.mxu0 %v1843_v31  ;;  %933 = vmatmul.mubr.bf16.gmra.mxu1 %v1844_v32 }
  0x66   : > { %812 = vmatprep.mubr.bf16.mxu0 %v1845_v33  ;;  %940 = vmatprep.mubr.bf16.mxu1 %v1847_v34 }
  0x6d   : > { %813 = vmatmul.mubr.bf16.gmra.mxu0 %v1849_v35  ;;  %941 = vmatmul.mubr.bf16.gmra.mxu1 %v1850_v36 }
  0x6e   : > { %820 = vmatprep.mubr.bf16.mxu0 %v1851_v37  ;;  %948 = vmatprep.mubr.bf16.mxu1 %v1853_v38 }
  0x75   : > { %821 = vmatmul.mubr.bf16.gmra.mxu0 %v1855_v39  ;;  %949 = vmatmul.mubr.bf16.gmra.mxu1 %v1856_v40 }
  0x76   : > { %828 = vmatprep.mubr.bf16.mxu0 %v1857_v41  ;;  %956 = vmatprep.mubr.bf16.mxu1 %v1859_v42 }
  0x7d   : > { %829 = vmatmul.mubr.bf16.gmra.mxu0 %v1861_v43  ;;  %957 = vmatmul.mubr.bf16.gmra.mxu1 %v1862_v44 }
  0x7e   : > { %836 = vmatprep.mubr.bf16.mxu0 %v1863_v45  ;;  %964 = vmatprep.mubr.bf16.mxu1 %v1865_v46 }
  0x85   : > { %837 = vmatmul.mubr.bf16.gmra.mxu0 %v1867_v47  ;;  %965 = vmatmul.mubr.bf16.gmra.mxu1 %v1868_v48 }
  0x86   : > { %844 = vmatprep.mubr.bf16.mxu0 %v1869_v49  ;;  %972 = vmatprep.mubr.bf16.mxu1 %v1871_v50 }
  0x8d   : > { %845 = vmatmul.mubr.bf16.gmra.mxu0 %v1873_v51  ;;  %973 = vmatmul.mubr.bf16.gmra.mxu1 %v1874_v52 }
  0x8e   : > { %852 = vmatprep.mubr.bf16.mxu0 %v1875_v53  ;;  %980 = vmatprep.mubr.bf16.mxu1 %v1877_v54 }
  0x95   : > { %853 = vmatmul.mubr.bf16.gmra.mxu0 %v1879_v55  ;;  %981 = vmatmul.mubr.bf16.gmra.mxu1 %v1880_v56 }
  0x96   : > { %860 = vmatprep.mubr.bf16.mxu0 %v1881_v57  ;;  %988 = vmatprep.mubr.bf16.mxu1 %v1883_v58 }
  0x9d   : > { %861 = vmatmul.mubr.bf16.gmra.mxu0 %v1885_v59  ;;  %989 = vmatmul.mubr.bf16.gmra.mxu1 %v1886_v60 }
  0x9e   : > { %868 = vmatprep.mubr.bf16.mxu0 %v1887_v61  ;;  %996 = vmatprep.mubr.bf16.mxu1 %v1889_v62 }
  0xa5   : > { %869 = vmatmul.mubr.bf16.gmra.mxu0 %v1891_v63  ;;  %997 = vmatmul.mubr.bf16.gmra.mxu1 %v1892_v0 }
  0xa6   : > { %876 = vmatprep.mubr.bf16.mxu0 %v1893_v1  ;;  %1004 = vmatprep.mubr.bf16.mxu1 %v1895_v2 }
  0xad   : > { %877 = vmatmul.mubr.bf16.gmra.mxu0 %v1897_v3  ;;  %1005 = vmatmul.mubr.bf16.gmra.mxu1 %v1898_v4 }
  0xae   : > { %884 = vmatprep.mubr.bf16.mxu0 %v1899_v5  ;;  %1012 = vmatprep.mubr.bf16.mxu1 %v1901_v6 }
  0xb5   : > { %885 = vmatmul.mubr.bf16.gmra.mxu0 %v1903_v7  ;;  %1013 = vmatmul.mubr.bf16.gmra.mxu1 %v1904_v8 }
  0xb6   : > { %892 = vmatprep.mubr.bf16.mxu0 %v1905_v9  ;;  %1020 = vmatprep.mubr.bf16.mxu1 %v1907_v10 }
  0xbd   : > { %893 = vmatmul.mubr.bf16.gmra.mxu0 %v1909_v11  ;;  %1021 = vmatmul.mubr.bf16.gmra.mxu1 %v1910_v12 }
  0xbe   : > { %900 = vmatprep.mubr.bf16.mxu0 %v1911_v13  ;;  %1028 = vmatprep.mubr.bf16.mxu1 %v1913_v14 }
  0xc5   : > { %901 = vmatmul.mubr.bf16.gmra.mxu0 %v1915_v15  ;;  %1029 = vmatmul.mubr.bf16.gmra.mxu1 %v1916_v16 }
 0x10d   : > { %v782_v18 = vpop.f32.mrf.mxu0  ;;  %v910_v19 = vpop.f32.mrf.mxu1 }
 0x10e   : > { %v783_v20 = vadd.f32 %v2135_v17, %v782_v18  ;;  %v911_v21 = vadd.f32 %v2135_v17, %v910_v19 }
 0x10f   : > { %v784_v22 = vpop.f32.mrf.mxu0  ;;  %v912_v23 = vpop.f32.mrf.mxu1 }
 0x110   : > { %v1037_v24 = vmax.f32 %v783_v20, 0.0  ;;  %v1069_v25 = vmax.f32 %v911_v21, 0.0 }
 0x111   : > { %v785_v26 = vpop.f32.mrf.mxu0  ;;  %v913_v27 = vpop.f32.mrf.mxu1 }
 0x112   : > { %v1684_v28 = vpack.c.bf16 %v1037_v24, %v1037_v24  ;;  %v1716_v29 = vpack.c.bf16 %v1069_v25, %v1069_v25  ;;  %v786_v30 = vadd.f32 %v2135_v17, %v785_v26  ;;  %v914_v31 = vadd.f32 %v2135_v17, %v913_v27 }
 0x113   : > { %v787_v32 = vpop.f32.mrf.mxu0  ;;  %v915_v33 = vpop.f32.mrf.mxu1 }
 0x114   : > { %1358 = vst.msk [vmem:[%s2143_s8] sm:$0xf] %vm1357_vm0, %v1684_v28  ;;  %1390 = vst.msk [vmem:[%s2143_s8 + $0x80] sm:$0xf] %vm1357_vm0, %v1716_v29  ;;  %v1038_v34 = vmax.f32 %v786_v30, 0.0  ;;  %v1070_v35 = vmax.f32 %v914_v31, 0.0 }
 0x115   : > { %v790_v36 = vpop.f32.mrf.mxu0  ;;  %v918_v37 = vpop.f32.mrf.mxu1 }
 0x116   : > { %v1685_v38 = vpack.c.bf16 %v1038_v34, %v1038_v34  ;;  %v1717_v39 = vpack.c.bf16 %v1070_v35, %v1070_v35  ;;  %v791_v40 = vadd.f32 %v2135_v17, %v790_v36  ;;  %v919_v41 = vadd.f32 %v2135_v17, %v918_v37 }
 0x117   : > { %v792_v42 = vpop.f32.mrf.mxu0  ;;  %v920_v43 = vpop.f32.mrf.mxu1 }
 0x118   : > { %1359 = vst.msk [vmem:[%s2143_s8 + $0x4] sm:$0xf] %vm1357_vm0, %v1685_v38  ;;  %1391 = vst.msk [vmem:[%s2143_s8 + $0x84] sm:$0xf] %vm1357_vm0, %v1717_v39  ;;  %v1039_v44 = vmax.f32 %v791_v40, 0.0  ;;  %v1071_v45 = vmax.f32 %v919_v41, 0.0 }
 0x119   : > { %v793_v46 = vpop.f32.mrf.mxu0  ;;  %v921_v47 = vpop.f32.mrf.mxu1 }
 0x11a   : > { %v1686_v48 = vpack.c.bf16 %v1039_v44, %v1039_v44  ;;  %v1718_v49 = vpack.c.bf16 %v1071_v45, %v1071_v45  ;;  %v794_v50 = vadd.f32 %v2135_v17, %v793_v46  ;;  %v922_v51 = vadd.f32 %v2135_v17, %v921_v47 }
 0x11b   : > { %v795_v52 = vpop.f32.mrf.mxu0  ;;  %v923_v53 = vpop.f32.mrf.mxu1 }
 0x11c   : > { %1360 = vst.msk [vmem:[%s2143_s8 + $0x8] sm:$0xf] %vm1357_vm0, %v1686_v48  ;;  %1392 = vst.msk [vmem:[%s2143_s8 + $0x88] sm:$0xf] %vm1357_vm0, %v1718_v49  ;;  %v1040_v54 = vmax.f32 %v794_v50, 0.0  ;;  %v1072_v55 = vmax.f32 %v922_v51, 0.0 }
 0x11d   : > { %v798_v56 = vpop.f32.mrf.mxu0  ;;  %v926_v57 = vpop.f32.mrf.mxu1 }
 0x11e   : > { %v1687_v58 = vpack.c.bf16 %v1040_v54, %v1040_v54  ;;  %v1719_v59 = vpack.c.bf16 %v1072_v55, %v1072_v55  ;;  %v799_v60 = vadd.f32 %v2135_v17, %v798_v56  ;;  %v927_v61 = vadd.f32 %v2135_v17, %v926_v57 }
 0x11f   : > { %v800_v62 = vpop.f32.mrf.mxu0  ;;  %v928_v63 = vpop.f32.mrf.mxu1 }
 0x120   : > { %1361 = vst.msk [vmem:[%s2143_s8 + $0xc] sm:$0xf] %vm1357_vm0, %v1687_v58  ;;  %1393 = vst.msk [vmem:[%s2143_s8 + $0x8c] sm:$0xf] %vm1357_vm0, %v1719_v59  ;;  %v1041_v0 = vmax.f32 %v799_v60, 0.0  ;;  %v1073_v1 = vmax.f32 %v927_v61, 0.0 }
 0x121   : > { %v801_v2 = vpop.f32.mrf.mxu0  ;;  %v929_v3 = vpop.f32.mrf.mxu1 }
 0x122   : > { %v1688_v4 = vpack.c.bf16 %v1041_v0, %v1041_v0  ;;  %v1720_v5 = vpack.c.bf16 %v1073_v1, %v1073_v1  ;;  %v802_v6 = vadd.f32 %v2135_v17, %v801_v2  ;;  %v930_v7 = vadd.f32 %v2135_v17, %v929_v3 }
 0x123   : > { %v803_v8 = vpop.f32.mrf.mxu0  ;;  %v931_v9 = vpop.f32.mrf.mxu1 }
 0x124   : > { %1362 = vst.msk [vmem:[%s2143_s8 + $0x10] sm:$0xf] %vm1357_vm0, %v1688_v4  ;;  %1394 = vst.msk [vmem:[%s2143_s8 + $0x90] sm:$0xf] %vm1357_vm0, %v1720_v5  ;;  %v1042_v10 = vmax.f32 %v802_v6, 0.0  ;;  %v1074_v11 = vmax.f32 %v930_v7, 0.0 }
 0x125   : > { %v806_v12 = vpop.f32.mrf.mxu0  ;;  %v934_v13 = vpop.f32.mrf.mxu1 }
 0x126   : > { %v1689_v14 = vpack.c.bf16 %v1042_v10, %v1042_v10  ;;  %v1721_v15 = vpack.c.bf16 %v1074_v11, %v1074_v11  ;;  %v807_v16 = vadd.f32 %v2135_v17, %v806_v12  ;;  %v935_v18 = vadd.f32 %v2135_v17, %v934_v13 }
 0x127   : > { %v808_v19 = vpop.f32.mrf.mxu0  ;;  %v936_v20 = vpop.f32.mrf.mxu1 }
 0x128   : > { %1363 = vst.msk [vmem:[%s2143_s8 + $0x14] sm:$0xf] %vm1357_vm0, %v1689_v14  ;;  %1395 = vst.msk [vmem:[%s2143_s8 + $0x94] sm:$0xf] %vm1357_vm0, %v1721_v15  ;;  %v1043_v21 = vmax.f32 %v807_v16, 0.0  ;;  %v1075_v22 = vmax.f32 %v935_v18, 0.0 }
 0x129   : > { %v809_v23 = vpop.f32.mrf.mxu0  ;;  %v937_v24 = vpop.f32.mrf.mxu1 }
 0x12a   : > { %v1690_v25 = vpack.c.bf16 %v1043_v21, %v1043_v21  ;;  %v1722_v26 = vpack.c.bf16 %v1075_v22, %v1075_v22  ;;  %v810_v27 = vadd.f32 %v2135_v17, %v809_v23  ;;  %v938_v28 = vadd.f32 %v2135_v17, %v937_v24 }
 0x12b   : > { %v811_v29 = vpop.f32.mrf.mxu0  ;;  %v939_v30 = vpop.f32.mrf.mxu1 }
 0x12c   : > { %1364 = vst.msk [vmem:[%s2143_s8 + $0x18] sm:$0xf] %vm1357_vm0, %v1690_v25  ;;  %1396 = vst.msk [vmem:[%s2143_s8 + $0x98] sm:$0xf] %vm1357_vm0, %v1722_v26  ;;  %v1044_v31 = vmax.f32 %v810_v27, 0.0  ;;  %v1076_v32 = vmax.f32 %v938_v28, 0.0 }
 0x12d   : > { %v814_v33 = vpop.f32.mrf.mxu0  ;;  %v942_v34 = vpop.f32.mrf.mxu1 }
 0x12e   : > { %v1691_v35 = vpack.c.bf16 %v1044_v31, %v1044_v31  ;;  %v1723_v36 = vpack.c.bf16 %v1076_v32, %v1076_v32  ;;  %v815_v37 = vadd.f32 %v2135_v17, %v814_v33  ;;  %v943_v38 = vadd.f32 %v2135_v17, %v942_v34 }
 0x12f   : > { %v816_v39 = vpop.f32.mrf.mxu0  ;;  %v944_v40 = vpop.f32.mrf.mxu1 }
 0x130   : > { %1365 = vst.msk [vmem:[%s2143_s8 + $0x1c] sm:$0xf] %vm1357_vm0, %v1691_v35  ;;  %1397 = vst.msk [vmem:[%s2143_s8 + $0x9c] sm:$0xf] %vm1357_vm0, %v1723_v36  ;;  %v1045_v41 = vmax.f32 %v815_v37, 0.0  ;;  %v1077_v42 = vmax.f32 %v943_v38, 0.0 }
 0x131   : > { %v817_v43 = vpop.f32.mrf.mxu0  ;;  %v945_v44 = vpop.f32.mrf.mxu1 }
 0x132   : > { %v1692_v45 = vpack.c.bf16 %v1045_v41, %v1045_v41  ;;  %v1724_v46 = vpack.c.bf16 %v1077_v42, %v1077_v42  ;;  %v818_v47 = vadd.f32 %v2135_v17, %v817_v43  ;;  %v946_v48 = vadd.f32 %v2135_v17, %v945_v44 }
 0x133   : > { %v819_v49 = vpop.f32.mrf.mxu0  ;;  %v947_v50 = vpop.f32.mrf.mxu1 }
 0x134   : > { %1366 = vst.msk [vmem:[%s2143_s8 + $0x20] sm:$0xf] %vm1357_vm0, %v1692_v45  ;;  %1398 = vst.msk [vmem:[%s2143_s8 + $0xa0] sm:$0xf] %vm1357_vm0, %v1724_v46  ;;  %v1046_v51 = vmax.f32 %v818_v47, 0.0  ;;  %v1078_v52 = vmax.f32 %v946_v48, 0.0 }
 0x135   : > { %v822_v53 = vpop.f32.mrf.mxu0  ;;  %v950_v54 = vpop.f32.mrf.mxu1 }
 0x136   : > { %v1693_v55 = vpack.c.bf16 %v1046_v51, %v1046_v51  ;;  %v1725_v56 = vpack.c.bf16 %v1078_v52, %v1078_v52  ;;  %v823_v57 = vadd.f32 %v2135_v17, %v822_v53  ;;  %v951_v58 = vadd.f32 %v2135_v17, %v950_v54 }
 0x137   : > { %v824_v59 = vpop.f32.mrf.mxu0  ;;  %v952_v60 = vpop.f32.mrf.mxu1 }
 0x138   : > { %1367 = vst.msk [vmem:[%s2143_s8 + $0x24] sm:$0xf] %vm1357_vm0, %v1693_v55  ;;  %1399 = vst.msk [vmem:[%s2143_s8 + $0xa4] sm:$0xf] %vm1357_vm0, %v1725_v56  ;;  %v1047_v61 = vmax.f32 %v823_v57, 0.0  ;;  %v1079_v62 = vmax.f32 %v951_v58, 0.0 }
 0x139   : > { %v825_v63 = vpop.f32.mrf.mxu0  ;;  %v953_v0 = vpop.f32.mrf.mxu1 }
 0x13a   : > { %v1694_v1 = vpack.c.bf16 %v1047_v61, %v1047_v61  ;;  %v1726_v2 = vpack.c.bf16 %v1079_v62, %v1079_v62  ;;  %v826_v3 = vadd.f32 %v2135_v17, %v825_v63  ;;  %v954_v4 = vadd.f32 %v2135_v17, %v953_v0 }
 0x13b   : > { %v827_v5 = vpop.f32.mrf.mxu0  ;;  %v955_v6 = vpop.f32.mrf.mxu1 }
 0x13c   : > { %1368 = vst.msk [vmem:[%s2143_s8 + $0x28] sm:$0xf] %vm1357_vm0, %v1694_v1  ;;  %1400 = vst.msk [vmem:[%s2143_s8 + $0xa8] sm:$0xf] %vm1357_vm0, %v1726_v2  ;;  %v1048_v7 = vmax.f32 %v826_v3, 0.0  ;;  %v1080_v8 = vmax.f32 %v954_v4, 0.0 }
 0x13d   : > { %v830_v9 = vpop.f32.mrf.mxu0  ;;  %v958_v10 = vpop.f32.mrf.mxu1 }
 0x13e   : > { %v1695_v11 = vpack.c.bf16 %v1048_v7, %v1048_v7  ;;  %v1727_v12 = vpack.c.bf16 %v1080_v8, %v1080_v8  ;;  %v831_v13 = vadd.f32 %v2135_v17, %v830_v9  ;;  %v959_v14 = vadd.f32 %v2135_v17, %v958_v10 }
 0x13f   : > { %v832_v15 = vpop.f32.mrf.mxu0  ;;  %v960_v16 = vpop.f32.mrf.mxu1 }
 0x140   : > { %1369 = vst.msk [vmem:[%s2143_s8 + $0x2c] sm:$0xf] %vm1357_vm0, %v1695_v11  ;;  %1401 = vst.msk [vmem:[%s2143_s8 + $0xac] sm:$0xf] %vm1357_vm0, %v1727_v12  ;;  %v1049_v18 = vmax.f32 %v831_v13, 0.0  ;;  %v1081_v19 = vmax.f32 %v959_v14, 0.0 }
 0x141   : > { %v833_v20 = vpop.f32.mrf.mxu0  ;;  %v961_v21 = vpop.f32.mrf.mxu1 }
 0x142   : > { %v1696_v22 = vpack.c.bf16 %v1049_v18, %v1049_v18  ;;  %v1728_v23 = vpack.c.bf16 %v1081_v19, %v1081_v19  ;;  %v834_v24 = vadd.f32 %v2135_v17, %v833_v20  ;;  %v962_v25 = vadd.f32 %v2135_v17, %v961_v21 }
 0x143   : > { %v835_v26 = vpop.f32.mrf.mxu0  ;;  %v963_v27 = vpop.f32.mrf.mxu1 }
 0x144   : > { %1370 = vst.msk [vmem:[%s2143_s8 + $0x30] sm:$0xf] %vm1357_vm0, %v1696_v22  ;;  %1402 = vst.msk [vmem:[%s2143_s8 + $0xb0] sm:$0xf] %vm1357_vm0, %v1728_v23  ;;  %v1050_v28 = vmax.f32 %v834_v24, 0.0  ;;  %v1082_v29 = vmax.f32 %v962_v25, 0.0 }
 0x145   : > { %v838_v30 = vpop.f32.mrf.mxu0  ;;  %v966_v31 = vpop.f32.mrf.mxu1 }
 0x146   : > { %v1697_v32 = vpack.c.bf16 %v1050_v28, %v1050_v28  ;;  %v1729_v33 = vpack.c.bf16 %v1082_v29, %v1082_v29  ;;  %v839_v34 = vadd.f32 %v2135_v17, %v838_v30  ;;  %v967_v35 = vadd.f32 %v2135_v17, %v966_v31 }
 0x147   : > { %v840_v36 = vpop.f32.mrf.mxu0  ;;  %v968_v37 = vpop.f32.mrf.mxu1 }
 0x148   : > { %1371 = vst.msk [vmem:[%s2143_s8 + $0x34] sm:$0xf] %vm1357_vm0, %v1697_v32  ;;  %1403 = vst.msk [vmem:[%s2143_s8 + $0xb4] sm:$0xf] %vm1357_vm0, %v1729_v33  ;;  %v1051_v38 = vmax.f32 %v839_v34, 0.0  ;;  %v1083_v39 = vmax.f32 %v967_v35, 0.0 }
 0x149   : > { %v841_v40 = vpop.f32.mrf.mxu0  ;;  %v969_v41 = vpop.f32.mrf.mxu1 }
 0x14a   : > { %v1698_v42 = vpack.c.bf16 %v1051_v38, %v1051_v38  ;;  %v1730_v43 = vpack.c.bf16 %v1083_v39, %v1083_v39  ;;  %v842_v44 = vadd.f32 %v2135_v17, %v841_v40  ;;  %v970_v45 = vadd.f32 %v2135_v17, %v969_v41 }
 0x14b   : > { %v843_v46 = vpop.f32.mrf.mxu0  ;;  %v971_v47 = vpop.f32.mrf.mxu1 }
 0x14c   : > { %1372 = vst.msk [vmem:[%s2143_s8 + $0x38] sm:$0xf] %vm1357_vm0, %v1698_v42  ;;  %1404 = vst.msk [vmem:[%s2143_s8 + $0xb8] sm:$0xf] %vm1357_vm0, %v1730_v43  ;;  %v1052_v48 = vmax.f32 %v842_v44, 0.0  ;;  %v1084_v49 = vmax.f32 %v970_v45, 0.0 }
 0x14d   : > { %v846_v50 = vpop.f32.mrf.mxu0  ;;  %v974_v51 = vpop.f32.mrf.mxu1 }
 0x14e   : > { %v1699_v52 = vpack.c.bf16 %v1052_v48, %v1052_v48  ;;  %v1731_v53 = vpack.c.bf16 %v1084_v49, %v1084_v49  ;;  %v847_v54 = vadd.f32 %v2135_v17, %v846_v50  ;;  %v975_v55 = vadd.f32 %v2135_v17, %v974_v51 }
 0x14f   : > { %v848_v56 = vpop.f32.mrf.mxu0  ;;  %v976_v57 = vpop.f32.mrf.mxu1 }
 0x150   : > { %1373 = vst.msk [vmem:[%s2143_s8 + $0x3c] sm:$0xf] %vm1357_vm0, %v1699_v52  ;;  %1405 = vst.msk [vmem:[%s2143_s8 + $0xbc] sm:$0xf] %vm1357_vm0, %v1731_v53  ;;  %v1053_v58 = vmax.f32 %v847_v54, 0.0  ;;  %v1085_v59 = vmax.f32 %v975_v55, 0.0 }
 0x151   : > { %v849_v60 = vpop.f32.mrf.mxu0  ;;  %v977_v61 = vpop.f32.mrf.mxu1 }
 0x152   : > { %v1700_v62 = vpack.c.bf16 %v1053_v58, %v1053_v58  ;;  %v1732_v63 = vpack.c.bf16 %v1085_v59, %v1085_v59  ;;  %v850_v0 = vadd.f32 %v2135_v17, %v849_v60  ;;  %v978_v1 = vadd.f32 %v2135_v17, %v977_v61 }
 0x153   : > { %v851_v2 = vpop.f32.mrf.mxu0  ;;  %v979_v3 = vpop.f32.mrf.mxu1 }
 0x154   : > { %1374 = vst.msk [vmem:[%s2143_s8 + $0x40] sm:$0xf] %vm1357_vm0, %v1700_v62  ;;  %1406 = vst.msk [vmem:[%s2143_s8 + $0xc0] sm:$0xf] %vm1357_vm0, %v1732_v63  ;;  %v1054_v4 = vmax.f32 %v850_v0, 0.0  ;;  %v1086_v5 = vmax.f32 %v978_v1, 0.0 }
 0x155   : > { %v854_v6 = vpop.f32.mrf.mxu0  ;;  %v982_v7 = vpop.f32.mrf.mxu1 }
 0x156   : > { %v1701_v8 = vpack.c.bf16 %v1054_v4, %v1054_v4  ;;  %v1733_v9 = vpack.c.bf16 %v1086_v5, %v1086_v5  ;;  %v855_v10 = vadd.f32 %v2135_v17, %v854_v6  ;;  %v983_v11 = vadd.f32 %v2135_v17, %v982_v7 }
 0x157   : > { %v856_v12 = vpop.f32.mrf.mxu0  ;;  %v984_v13 = vpop.f32.mrf.mxu1 }
 0x158   : > { %1375 = vst.msk [vmem:[%s2143_s8 + $0x44] sm:$0xf] %vm1357_vm0, %v1701_v8  ;;  %1407 = vst.msk [vmem:[%s2143_s8 + $0xc4] sm:$0xf] %vm1357_vm0, %v1733_v9  ;;  %v1055_v14 = vmax.f32 %v855_v10, 0.0  ;;  %v1087_v15 = vmax.f32 %v983_v11, 0.0 }
 0x159   : > { %v857_v16 = vpop.f32.mrf.mxu0  ;;  %v985_v18 = vpop.f32.mrf.mxu1 }
 0x15a   : > { %v1702_v19 = vpack.c.bf16 %v1055_v14, %v1055_v14  ;;  %v1734_v20 = vpack.c.bf16 %v1087_v15, %v1087_v15  ;;  %v858_v21 = vadd.f32 %v2135_v17, %v857_v16  ;;  %v986_v22 = vadd.f32 %v2135_v17, %v985_v18 }
 0x15b   : > { %v859_v23 = vpop.f32.mrf.mxu0  ;;  %v987_v24 = vpop.f32.mrf.mxu1 }
 0x15c   : > { %1376 = vst.msk [vmem:[%s2143_s8 + $0x48] sm:$0xf] %vm1357_vm0, %v1702_v19  ;;  %1408 = vst.msk [vmem:[%s2143_s8 + $0xc8] sm:$0xf] %vm1357_vm0, %v1734_v20  ;;  %v1056_v25 = vmax.f32 %v858_v21, 0.0  ;;  %v1088_v26 = vmax.f32 %v986_v22, 0.0 }
 0x15d   : > { %v862_v27 = vpop.f32.mrf.mxu0  ;;  %v990_v28 = vpop.f32.mrf.mxu1 }
 0x15e   : > { %v1703_v29 = vpack.c.bf16 %v1056_v25, %v1056_v25  ;;  %v1735_v30 = vpack.c.bf16 %v1088_v26, %v1088_v26  ;;  %v863_v31 = vadd.f32 %v2135_v17, %v862_v27  ;;  %v991_v32 = vadd.f32 %v2135_v17, %v990_v28 }
 0x15f   : > { %v864_v33 = vpop.f32.mrf.mxu0  ;;  %v992_v34 = vpop.f32.mrf.mxu1 }
 0x160   : > { %1377 = vst.msk [vmem:[%s2143_s8 + $0x4c] sm:$0xf] %vm1357_vm0, %v1703_v29  ;;  %1409 = vst.msk [vmem:[%s2143_s8 + $0xcc] sm:$0xf] %vm1357_vm0, %v1735_v30  ;;  %v1057_v35 = vmax.f32 %v863_v31, 0.0  ;;  %v1089_v36 = vmax.f32 %v991_v32, 0.0 }
 0x161   : > { %v865_v37 = vpop.f32.mrf.mxu0  ;;  %v993_v38 = vpop.f32.mrf.mxu1 }
 0x162   : > { %v1704_v39 = vpack.c.bf16 %v1057_v35, %v1057_v35  ;;  %v1736_v40 = vpack.c.bf16 %v1089_v36, %v1089_v36  ;;  %v866_v41 = vadd.f32 %v2135_v17, %v865_v37  ;;  %v994_v42 = vadd.f32 %v2135_v17, %v993_v38 }
 0x163   : > { %v867_v43 = vpop.f32.mrf.mxu0  ;;  %v995_v44 = vpop.f32.mrf.mxu1 }
 0x164   : > { %1378 = vst.msk [vmem:[%s2143_s8 + $0x50] sm:$0xf] %vm1357_vm0, %v1704_v39  ;;  %1410 = vst.msk [vmem:[%s2143_s8 + $0xd0] sm:$0xf] %vm1357_vm0, %v1736_v40  ;;  %v1058_v45 = vmax.f32 %v866_v41, 0.0  ;;  %v1090_v46 = vmax.f32 %v994_v42, 0.0 }
 0x165   : > { %v870_v47 = vpop.f32.mrf.mxu0  ;;  %v998_v48 = vpop.f32.mrf.mxu1 }
 0x166   : > { %v1705_v49 = vpack.c.bf16 %v1058_v45, %v1058_v45  ;;  %v1737_v50 = vpack.c.bf16 %v1090_v46, %v1090_v46  ;;  %v871_v51 = vadd.f32 %v2135_v17, %v870_v47  ;;  %v999_v52 = vadd.f32 %v2135_v17, %v998_v48 }
 0x167   : > { %v872_v53 = vpop.f32.mrf.mxu0  ;;  %v1000_v54 = vpop.f32.mrf.mxu1 }
 0x168   : > { %1379 = vst.msk [vmem:[%s2143_s8 + $0x54] sm:$0xf] %vm1357_vm0, %v1705_v49  ;;  %1411 = vst.msk [vmem:[%s2143_s8 + $0xd4] sm:$0xf] %vm1357_vm0, %v1737_v50  ;;  %v1059_v55 = vmax.f32 %v871_v51, 0.0  ;;  %v1091_v56 = vmax.f32 %v999_v52, 0.0 }
 0x169   : > { %v873_v57 = vpop.f32.mrf.mxu0  ;;  %v1001_v58 = vpop.f32.mrf.mxu1 }
 0x16a   : > { %v1706_v59 = vpack.c.bf16 %v1059_v55, %v1059_v55  ;;  %v1738_v60 = vpack.c.bf16 %v1091_v56, %v1091_v56  ;;  %v874_v61 = vadd.f32 %v2135_v17, %v873_v57  ;;  %v1002_v62 = vadd.f32 %v2135_v17, %v1001_v58 }
 0x16b   : > { %v875_v63 = vpop.f32.mrf.mxu0  ;;  %v1003_v0 = vpop.f32.mrf.mxu1 }
 0x16c   : > { %1380 = vst.msk [vmem:[%s2143_s8 + $0x58] sm:$0xf] %vm1357_vm0, %v1706_v59  ;;  %1412 = vst.msk [vmem:[%s2143_s8 + $0xd8] sm:$0xf] %vm1357_vm0, %v1738_v60  ;;  %v1060_v1 = vmax.f32 %v874_v61, 0.0  ;;  %v1092_v2 = vmax.f32 %v1002_v62, 0.0 }
 0x16d   : > { %v878_v3 = vpop.f32.mrf.mxu0  ;;  %v1006_v4 = vpop.f32.mrf.mxu1 }
 0x16e   : > { %v1707_v5 = vpack.c.bf16 %v1060_v1, %v1060_v1  ;;  %v1739_v6 = vpack.c.bf16 %v1092_v2, %v1092_v2  ;;  %v879_v7 = vadd.f32 %v2135_v17, %v878_v3  ;;  %v1007_v8 = vadd.f32 %v2135_v17, %v1006_v4 }
 0x16f   : > { %v880_v9 = vpop.f32.mrf.mxu0  ;;  %v1008_v10 = vpop.f32.mrf.mxu1 }
 0x170   : > { %1381 = vst.msk [vmem:[%s2143_s8 + $0x5c] sm:$0xf] %vm1357_vm0, %v1707_v5  ;;  %1413 = vst.msk [vmem:[%s2143_s8 + $0xdc] sm:$0xf] %vm1357_vm0, %v1739_v6  ;;  %v1061_v11 = vmax.f32 %v879_v7, 0.0  ;;  %v1093_v12 = vmax.f32 %v1007_v8, 0.0 }
 0x171   : > { %v881_v13 = vpop.f32.mrf.mxu0  ;;  %v1009_v14 = vpop.f32.mrf.mxu1 }
 0x172   : > { %v1708_v15 = vpack.c.bf16 %v1061_v11, %v1061_v11  ;;  %v1740_v16 = vpack.c.bf16 %v1093_v12, %v1093_v12  ;;  %v882_v18 = vadd.f32 %v2135_v17, %v881_v13  ;;  %v1010_v19 = vadd.f32 %v2135_v17, %v1009_v14 }
 0x173   : > { %v883_v20 = vpop.f32.mrf.mxu0  ;;  %v1011_v21 = vpop.f32.mrf.mxu1 }
 0x174   : > { %1382 = vst.msk [vmem:[%s2143_s8 + $0x60] sm:$0xf] %vm1357_vm0, %v1708_v15  ;;  %1414 = vst.msk [vmem:[%s2143_s8 + $0xe0] sm:$0xf] %vm1357_vm0, %v1740_v16  ;;  %v1062_v22 = vmax.f32 %v882_v18, 0.0  ;;  %v1094_v23 = vmax.f32 %v1010_v19, 0.0 }
 0x175   : > { %v886_v24 = vpop.f32.mrf.mxu0  ;;  %v1014_v25 = vpop.f32.mrf.mxu1 }
 0x176   : > { %v1709_v26 = vpack.c.bf16 %v1062_v22, %v1062_v22  ;;  %v1741_v27 = vpack.c.bf16 %v1094_v23, %v1094_v23  ;;  %v887_v28 = vadd.f32 %v2135_v17, %v886_v24  ;;  %v1015_v29 = vadd.f32 %v2135_v17, %v1014_v25 }
 0x177   : > { %v888_v30 = vpop.f32.mrf.mxu0  ;;  %v1016_v31 = vpop.f32.mrf.mxu1 }
 0x178   : > { %1383 = vst.msk [vmem:[%s2143_s8 + $0x64] sm:$0xf] %vm1357_vm0, %v1709_v26  ;;  %1415 = vst.msk [vmem:[%s2143_s8 + $0xe4] sm:$0xf] %vm1357_vm0, %v1741_v27  ;;  %v1063_v32 = vmax.f32 %v887_v28, 0.0  ;;  %v1095_v33 = vmax.f32 %v1015_v29, 0.0 }
 0x179   : > { %v889_v34 = vpop.f32.mrf.mxu0  ;;  %v1017_v35 = vpop.f32.mrf.mxu1 }
 0x17a   : > { %v1710_v36 = vpack.c.bf16 %v1063_v32, %v1063_v32  ;;  %v1742_v37 = vpack.c.bf16 %v1095_v33, %v1095_v33  ;;  %v890_v38 = vadd.f32 %v2135_v17, %v889_v34  ;;  %v1018_v39 = vadd.f32 %v2135_v17, %v1017_v35 }
 0x17b   : > { %v891_v40 = vpop.f32.mrf.mxu0  ;;  %v1019_v41 = vpop.f32.mrf.mxu1 }
 0x17c   : > { %1384 = vst.msk [vmem:[%s2143_s8 + $0x68] sm:$0xf] %vm1357_vm0, %v1710_v36  ;;  %1416 = vst.msk [vmem:[%s2143_s8 + $0xe8] sm:$0xf] %vm1357_vm0, %v1742_v37  ;;  %v1064_v42 = vmax.f32 %v890_v38, 0.0  ;;  %v1096_v43 = vmax.f32 %v1018_v39, 0.0 }
 0x17d   : > { %v894_v44 = vpop.f32.mrf.mxu0  ;;  %v1022_v45 = vpop.f32.mrf.mxu1 }
 0x17e   : > { %v1711_v46 = vpack.c.bf16 %v1064_v42, %v1064_v42  ;;  %v1743_v47 = vpack.c.bf16 %v1096_v43, %v1096_v43  ;;  %v895_v48 = vadd.f32 %v2135_v17, %v894_v44  ;;  %v1023_v49 = vadd.f32 %v2135_v17, %v1022_v45 }
 0x17f   : > { %v896_v50 = vpop.f32.mrf.mxu0  ;;  %v1024_v51 = vpop.f32.mrf.mxu1 }
 0x180   : > { %1385 = vst.msk [vmem:[%s2143_s8 + $0x6c] sm:$0xf] %vm1357_vm0, %v1711_v46  ;;  %1417 = vst.msk [vmem:[%s2143_s8 + $0xec] sm:$0xf] %vm1357_vm0, %v1743_v47  ;;  %v1065_v52 = vmax.f32 %v895_v48, 0.0  ;;  %v1097_v53 = vmax.f32 %v1023_v49, 0.0 }
 0x181   : > { %v897_v54 = vpop.f32.mrf.mxu0  ;;  %v1025_v55 = vpop.f32.mrf.mxu1 }
 0x182   : > { %v1712_v56 = vpack.c.bf16 %v1065_v52, %v1065_v52  ;;  %v1744_v57 = vpack.c.bf16 %v1097_v53, %v1097_v53  ;;  %v898_v58 = vadd.f32 %v2135_v17, %v897_v54  ;;  %v1026_v59 = vadd.f32 %v2135_v17, %v1025_v55 }
 0x183   : > { %v899_v60 = vpop.f32.mrf.mxu0  ;;  %v1027_v61 = vpop.f32.mrf.mxu1 }
 0x184   : > { %1386 = vst.msk [vmem:[%s2143_s8 + $0x70] sm:$0xf] %vm1357_vm0, %v1712_v56  ;;  %1418 = vst.msk [vmem:[%s2143_s8 + $0xf0] sm:$0xf] %vm1357_vm0, %v1744_v57  ;;  %v1066_v62 = vmax.f32 %v898_v58, 0.0  ;;  %v1098_v63 = vmax.f32 %v1026_v59, 0.0 }
 0x185   : > { %v902_v0 = vpop.f32.mrf.mxu0  ;;  %v1030_v1 = vpop.f32.mrf.mxu1 }
 0x186   : > { %v1713_v2 = vpack.c.bf16 %v1066_v62, %v1066_v62  ;;  %v1745_v3 = vpack.c.bf16 %v1098_v63, %v1098_v63  ;;  %v903_v4 = vadd.f32 %v2135_v17, %v902_v0  ;;  %v1031_v5 = vadd.f32 %v2135_v17, %v1030_v1 }
 0x187   : > { %v904_v6 = vpop.f32.mrf.mxu0  ;;  %v1032_v7 = vpop.f32.mrf.mxu1 }
 0x188   : > { %1387 = vst.msk [vmem:[%s2143_s8 + $0x74] sm:$0xf] %vm1357_vm0, %v1713_v2  ;;  %1419 = vst.msk [vmem:[%s2143_s8 + $0xf4] sm:$0xf] %vm1357_vm0, %v1745_v3  ;;  %v1067_v8 = vmax.f32 %v903_v4, 0.0  ;;  %v1099_v9 = vmax.f32 %v1031_v5, 0.0 }
 0x189   : > { %v905_v10 = vpop.f32.mrf.mxu0  ;;  %v1033_v11 = vpop.f32.mrf.mxu1 }
 0x18a   : > { %v1714_v12 = vpack.c.bf16 %v1067_v8, %v1067_v8  ;;  %v1746_v13 = vpack.c.bf16 %v1099_v9, %v1099_v9  ;;  %v906_v14 = vadd.f32 %v2135_v17, %v905_v10  ;;  %v1034_v15 = vadd.f32 %v2135_v17, %v1033_v11 }
 0x18b   : > { %v907_v16 = vpop.f32.mrf.mxu0  ;;  %v1035_v18 = vpop.f32.mrf.mxu1 }
 0x18c   : > { %1388 = vst.msk [vmem:[%s2143_s8 + $0x78] sm:$0xf] %vm1357_vm0, %v1714_v12  ;;  %1420 = vst.msk [vmem:[%s2143_s8 + $0xf8] sm:$0xf] %vm1357_vm0, %v1746_v13  ;;  %v1068_v19 = vmax.f32 %v906_v14, 0.0  ;;  %v1100_v20 = vmax.f32 %v1034_v15, 0.0 }
 0x18e   : > { %v1715_v21 = vpack.c.bf16 %v1068_v19, %v1068_v19  ;;  %v1747_v22 = vpack.c.bf16 %v1100_v20, %v1100_v20 }
 0x190   : > { %1389 = vst.msk [vmem:[%s2143_s8 + $0x7c] sm:$0xf] %vm1357_vm0, %v1715_v21  ;;  %1421 = vst.msk [vmem:[%s2143_s8 + $0xfc] sm:$0xf] %vm1357_vm0, %v1747_v22 }
 0x191 PF: > { %s13_s14 = sadd.s32 1, %s1939_s14   ;;  %s2348_s12 = smov %s1935_s13 }
 0x192   : > { %p10_p5 = scmp.ge.s32.totalorder %s13_s14, 18   ;;  %s2349_s13 = smov %s2351_s15 }
 0x194   :  { %12 = sbr.rel (!%p10_p5) target bundleno = 2 (0x2), region = 68 }

</bundles_post_ra>
